<compile_context>
chip_gen: v7x
topology: tpu7x:2x2x1
jax: 0.10.0
libtpu: 0.0.40
codegen_flags: <defaults>
</compile_context>

<pallas_src>
import functools

import jax
import jax.numpy as jnp
from jax.experimental import pallas as pl
from jax.experimental.pallas import tpu as pltpu

LOG_STD_MIN = -20.0
LOG_STD_MAX = 2.0


def _round_up(x, m):
    return ((x + m - 1) // m) * m


def _actor_kernel(x_ref, w1_ref, b1_ref, w2_ref, b2_ref,
                  wmu_ref, bmu_ref, wls_ref, bls_ref,
                  mu_ref, ls_ref):
    # fc1 + relu
    x = x_ref[...]
    h1 = jnp.dot(x, w1_ref[...], preferred_element_type=jnp.float32) + b1_ref[...]
    h1 = jnp.maximum(h1, 0.0)
    # fc2 + relu
    h2 = jnp.dot(h1, w2_ref[...], preferred_element_type=jnp.float32) + b2_ref[...]
    h2 = jnp.maximum(h2, 0.0)
    # mu head (narrow output, no padding lanes written to HBM)
    mu = jnp.dot(h2, wmu_ref[...], preferred_element_type=jnp.float32) + bmu_ref[...]
    mu_ref[...] = mu.astype(mu_ref.dtype)
    # log_std head + clamp
    ls = jnp.dot(h2, wls_ref[...], preferred_element_type=jnp.float32) + bls_ref[...]
    ls_ref[...] = jnp.clip(ls, LOG_STD_MIN, LOG_STD_MAX).astype(ls_ref.dtype)


def _resident_spec(shape):
    """Full-array block, constant index map, single-buffered (stays in VMEM)."""
    return pl.BlockSpec(shape, lambda i: (0, 0), pipeline_mode=pl.Buffered(1))


def actor_forward(state, params, *, tile_b=4096):
    """state: (B, state_size) f32.
    params: dict of (in, out) weights and (1, out) biases (PyTorch weight.T).
    Returns (mu, log_std), each (B, action_size) f32.
    """
    B, state_size = state.shape
    hidden = params["w1"].shape[1]
    action_size = params["wmu"].shape[1]

    # --- batch tiling: evenly-sized tiles (multiple of 8 sublanes) so ragged
    #     batches don't pad an entire extra tile; keep >=2 steps for large B
    #     so v7x's two TensorCores both get grid work.
    n_tiles = max(pl.cdiv(B, tile_b), 1)
    if B >= 2048 and n_tiles < 2:
        n_tiles = 2
    tb = _round_up(pl.cdiv(B, n_tiles), 8)
    b_pad = n_tiles * tb
    if b_pad != B:
        state = jnp.pad(state, ((0, b_pad - B), (0, 0)))
    grid = (n_tiles,)

    mu_pad, ls_pad = pl.pallas_call(
        _actor_kernel,
        grid=grid,
        in_specs=[
            # streamed activation tile
            pl.BlockSpec((tb, state_size), lambda i: (i, 0)),
            # resident weights / biases
            _resident_spec((state_size, hidden)),
            _resident_spec((1, hidden)),
            _resident_spec((hidden, hidden)),
            _resident_spec((1, hidden)),
            _resident_spec((hidden, action_size)),
            _resident_spec((1, action_size)),
            _resident_spec((hidden, action_size)),
            _resident_spec((1, action_size)),
        ],
        out_specs=[
            pl.BlockSpec((tb, action_size), lambda i: (i, 0)),
            pl.BlockSpec((tb, action_size), lambda i: (i, 0)),
        ],
        out_shape=(
            jax.ShapeDtypeStruct((b_pad, action_size), jnp.float32),
            jax.ShapeDtypeStruct((b_pad, action_size), jnp.float32),
        ),
        compiler_params=pltpu.CompilerParams(
            dimension_semantics=("parallel",),   # shards batch across TCs on v7x
            vmem_limit_bytes=48 * 1024 * 1024,   # fits 4K-row tiles on all gens
        ),
    )(state, params["w1"], params["b1"], params["w2"], params["b2"],
      params["wmu"], params["bmu"], params["wls"], params["bls"])

    return mu_pad[:B], ls_pad[:B]


def init_actor_params(key, state_size, action_size, hidden_size=32, init_w=0.003):
    """Deterministic init mirroring the PyTorch module's layer shapes.
    Weights are kept as (in_features, out_features) = PyTorch weight.T."""
    ks = jax.random.split(key, 8)

    def uniform(k, shape, bound):
        return jax.random.uniform(k, shape, jnp.float32, -bound, bound)

    # nn.Linear default init bound = 1/sqrt(fan_in)
    b1_bound = 1.0 / jnp.sqrt(state_size)
    b2_bound = 1.0 / jnp.sqrt(hidden_size)
    return {
        "w1": uniform(ks[0], (state_size, hidden_size), b1_bound),
        "b1": uniform(ks[1], (1, hidden_size), b1_bound),
        "w2": uniform(ks[2], (hidden_size, hidden_size), b2_bound),
        "b2": uniform(ks[3], (1, hidden_size), b2_bound),
        "wmu": uniform(ks[4], (hidden_size, action_size), b2_bound),
        "bmu": uniform(ks[5], (1, action_size), b2_bound),
        "wls": uniform(ks[6], (hidden_size, action_size), b2_bound),
        "bls": uniform(ks[7], (1, action_size), b2_bound),
    }


def actor_forward_ref(state, params):
    """Pure-JAX reference for correctness checking."""
    h1 = jnp.maximum(state @ params["w1"] + params["b1"], 0.0)
    h2 = jnp.maximum(h1 @ params["w2"] + params["b2"], 0.0)
    mu = h2 @ params["wmu"] + params["bmu"]
    ls = jnp.clip(h2 @ params["wls"] + params["bls"], LOG_STD_MIN, LOG_STD_MAX)
    return mu, ls


if __name__ == "__main__":
    key = jax.random.PRNGKey(0)
    k_param, k_state = jax.random.split(key)

    batch = 2
    state_size = 4
    action_size = 4
    hidden_size = 32

    params = init_actor_params(k_param, state_size, action_size, hidden_size)
    state = jax.random.normal(k_state, (batch, state_size), jnp.float32)

    mu, log_std = actor_forward(state, params)
    jax.block_until_ready((mu, log_std))

    mu_ref, ls_ref = actor_forward_ref(state, params)
    assert mu.shape == (batch, action_size) and log_std.shape == (batch, action_size)
    assert jnp.allclose(mu, mu_ref, atol=1e-5, rtol=1e-5)
    assert jnp.allclose(log_std, ls_ref, atol=1e-5, rtol=1e-5)

    # Also exercise the multi-step batch-grid path (ragged B, several tiles).
    big_state = jax.random.normal(k_state, (2050, state_size), jnp.float32)
    mu_b, ls_b = actor_forward(big_state, params, tile_b=1024)
    jax.block_until_ready((mu_b, ls_b))
    mu_br, ls_br = actor_forward_ref(big_state, params)
    assert mu_b.shape == (2050, action_size) and ls_b.shape == (2050, action_size)
    assert jnp.allclose(mu_b, mu_br, atol=1e-5, rtol=1e-5)
    assert jnp.allclose(ls_b, ls_br, atol=1e-5, rtol=1e-5)

    print("KERNEL_OK")
</pallas_src>

<mosaic_0001>
module attributes {stable_mosaic.version = 11 : i64} {
  func.func @_actor_kernel(%arg0: i32, %arg1: memref<8x4xf32, #tpu.memory_space<vmem>>, %arg2: memref<4x32xf32, #tpu.memory_space<vmem>>, %arg3: memref<1x32xf32, #tpu.memory_space<vmem>>, %arg4: memref<32x32xf32, #tpu.memory_space<vmem>>, %arg5: memref<1x32xf32, #tpu.memory_space<vmem>>, %arg6: memref<32x4xf32, #tpu.memory_space<vmem>>, %arg7: memref<1x4xf32, #tpu.memory_space<vmem>>, %arg8: memref<32x4xf32, #tpu.memory_space<vmem>>, %arg9: memref<1x4xf32, #tpu.memory_space<vmem>>, %arg10: memref<8x4xf32, #tpu.memory_space<vmem>>, %arg11: memref<8x4xf32, #tpu.memory_space<vmem>>) attributes {dimension_semantics = [#tpu.dimension_semantics<parallel>], iteration_bounds = array<i64: 1>, scalar_prefetch = 0 : i64, scratch_operands = 0 : i64, tpu.core_type = #tpu.core_type<tc>, window_params = [{transform_indices = @transform_0, window_bounds = array<i64: 8, 4>}, {pipeline_mode = #tpu.pipeline_mode<synchronous>, transform_indices = @transform_1, window_bounds = array<i64: 4, 32>}, {pipeline_mode = #tpu.pipeline_mode<synchronous>, transform_indices = @transform_2, window_bounds = array<i64: 1, 32>}, {pipeline_mode = #tpu.pipeline_mode<synchronous>, transform_indices = @transform_3, window_bounds = array<i64: 32, 32>}, {pipeline_mode = #tpu.pipeline_mode<synchronous>, transform_indices = @transform_4, window_bounds = array<i64: 1, 32>}, {pipeline_mode = #tpu.pipeline_mode<synchronous>, transform_indices = @transform_5, window_bounds = array<i64: 32, 4>}, {pipeline_mode = #tpu.pipeline_mode<synchronous>, transform_indices = @transform_6, window_bounds = array<i64: 1, 4>}, {pipeline_mode = #tpu.pipeline_mode<synchronous>, transform_indices = @transform_7, window_bounds = array<i64: 32, 4>}, {pipeline_mode = #tpu.pipeline_mode<synchronous>, transform_indices = @transform_8, window_bounds = array<i64: 1, 4>}, {transform_indices = @transform_9, window_bounds = array<i64: 8, 4>}, {transform_indices = @transform_10, window_bounds = array<i64: 8, 4>}]} {
    %c0 = arith.constant 0 : index
    %c0_0 = arith.constant 0 : index
    %0 = vector.load %arg1[%c0, %c0_0] : memref<8x4xf32, #tpu.memory_space<vmem>>, vector<8x4xf32>
    %c0_1 = arith.constant 0 : index
    %c0_2 = arith.constant 0 : index
    %1 = vector.load %arg2[%c0_1, %c0_2] : memref<4x32xf32, #tpu.memory_space<vmem>>, vector<4x32xf32>
    %cst = arith.constant dense<0.000000e+00> : vector<8x32xf32>
    %2 = tpu.matmul %0, %1, %cst {dimension_numbers = #tpu.dot_dimension_numbers<[1], [0], [0], [1], [0, 0, 1, 1], [], []>} : vector<8x4xf32>, vector<4x32xf32>, vector<8x32xf32> -> vector<8x32xf32>
    %c0_3 = arith.constant 0 : index
    %c0_4 = arith.constant 0 : index
    %3 = vector.load %arg3[%c0_3, %c0_4] : memref<1x32xf32, #tpu.memory_space<vmem>>, vector<1x32xf32>
    %4 = vector.broadcast %3 : vector<1x32xf32> to vector<8x32xf32>
    %5 = arith.addf %2, %4 : vector<8x32xf32>
    %cst_5 = arith.constant 0.000000e+00 : f32
    %6 = vector.broadcast %cst_5 : f32 to vector<8x32xf32>
    %7 = arith.maximumf %5, %6 : vector<8x32xf32>
    %c0_6 = arith.constant 0 : index
    %c0_7 = arith.constant 0 : index
    %8 = vector.load %arg4[%c0_6, %c0_7] : memref<32x32xf32, #tpu.memory_space<vmem>>, vector<32x32xf32>
    %cst_8 = arith.constant dense<0.000000e+00> : vector<8x32xf32>
    %9 = tpu.matmul %7, %8, %cst_8 {dimension_numbers = #tpu.dot_dimension_numbers<[1], [0], [0], [1], [0, 0, 1, 1], [], []>} : vector<8x32xf32>, vector<32x32xf32>, vector<8x32xf32> -> vector<8x32xf32>
    %c0_9 = arith.constant 0 : index
    %c0_10 = arith.constant 0 : index
    %10 = vector.load %arg5[%c0_9, %c0_10] : memref<1x32xf32, #tpu.memory_space<vmem>>, vector<1x32xf32>
    %11 = vector.broadcast %10 : vector<1x32xf32> to vector<8x32xf32>
    %12 = arith.addf %9, %11 : vector<8x32xf32>
    %cst_11 = arith.constant 0.000000e+00 : f32
    %13 = vector.broadcast %cst_11 : f32 to vector<8x32xf32>
    %14 = arith.maximumf %12, %13 : vector<8x32xf32>
    %c0_12 = arith.constant 0 : index
    %c0_13 = arith.constant 0 : index
    %15 = vector.load %arg6[%c0_12, %c0_13] : memref<32x4xf32, #tpu.memory_space<vmem>>, vector<32x4xf32>
    %cst_14 = arith.constant dense<0.000000e+00> : vector<8x4xf32>
    %16 = tpu.matmul %14, %15, %cst_14 {dimension_numbers = #tpu.dot_dimension_numbers<[1], [0], [0], [1], [0, 0, 1, 1], [], []>} : vector<8x32xf32>, vector<32x4xf32>, vector<8x4xf32> -> vector<8x4xf32>
    %c0_15 = arith.constant 0 : index
    %c0_16 = arith.constant 0 : index
    %17 = vector.load %arg7[%c0_15, %c0_16] : memref<1x4xf32, #tpu.memory_space<vmem>>, vector<1x4xf32>
    %18 = vector.broadcast %17 : vector<1x4xf32> to vector<8x4xf32>
    %19 = arith.addf %16, %18 : vector<8x4xf32>
    %c0_17 = arith.constant 0 : index
    %c0_18 = arith.constant 0 : index
    %20 = vector.load %arg10[%c0_17, %c0_18] : memref<8x4xf32, #tpu.memory_space<vmem>>, vector<8x4xf32>
    tpu.vector_store %arg10[%c0_17, %c0_18], %19 {strides = array<i32>} : memref<8x4xf32, #tpu.memory_space<vmem>>, vector<8x4xf32>,
    %c0_19 = arith.constant 0 : index
    %c0_20 = arith.constant 0 : index
    %21 = vector.load %arg8[%c0_19, %c0_20] : memref<32x4xf32, #tpu.memory_space<vmem>>, vector<32x4xf32>
    %cst_21 = arith.constant dense<0.000000e+00> : vector<8x4xf32>
    %22 = tpu.matmul %14, %21, %cst_21 {dimension_numbers = #tpu.dot_dimension_numbers<[1], [0], [0], [1], [0, 0, 1, 1], [], []>} : vector<8x32xf32>, vector<32x4xf32>, vector<8x4xf32> -> vector<8x4xf32>
    %c0_22 = arith.constant 0 : index
    %c0_23 = arith.constant 0 : index
    %23 = vector.load %arg9[%c0_22, %c0_23] : memref<1x4xf32, #tpu.memory_space<vmem>>, vector<1x4xf32>
    %24 = vector.broadcast %23 : vector<1x4xf32> to vector<8x4xf32>
    %25 = arith.addf %22, %24 : vector<8x4xf32>
    %cst_24 = arith.constant -2.000000e+01 : f32
    %cst_25 = arith.constant 2.000000e+00 : f32
    %26 = vector.broadcast %cst_24 : f32 to vector<8x4xf32>
    %27 = arith.maximumf %26, %25 : vector<8x4xf32>
    %28 = vector.broadcast %cst_25 : f32 to vector<8x4xf32>
    %29 = arith.minimumf %28, %27 : vector<8x4xf32>
    %c0_26 = arith.constant 0 : index
    %c0_27 = arith.constant 0 : index
    %30 = vector.load %arg11[%c0_26, %c0_27] : memref<8x4xf32, #tpu.memory_space<vmem>>, vector<8x4xf32>
    tpu.vector_store %arg11[%c0_26, %c0_27], %29 {strides = array<i32>} : memref<8x4xf32, #tpu.memory_space<vmem>>, vector<8x4xf32>,
    return
  }
  func.func @transform_0(%arg0: i32) -> (i32, i32) {
    %c0_i32 = arith.constant 0 : i32
    %c0_i32_0 = arith.constant 0 : i32
    return %arg0, %c0_i32 : i32, i32
  }
  func.func @transform_1(%arg0: i32) -> (i32, i32) {
    %c0_i32 = arith.constant 0 : i32
    %c0_i32_0 = arith.constant 0 : i32
    %c0_i32_1 = arith.constant 0 : i32
    return %c0_i32, %c0_i32_0 : i32, i32
  }
  func.func @transform_2(%arg0: i32) -> (i32, i32) {
    %c0_i32 = arith.constant 0 : i32
    %c0_i32_0 = arith.constant 0 : i32
    %c0_i32_1 = arith.constant 0 : i32
    return %c0_i32, %c0_i32_0 : i32, i32
  }
  func.func @transform_3(%arg0: i32) -> (i32, i32) {
    %c0_i32 = arith.constant 0 : i32
    %c0_i32_0 = arith.constant 0 : i32
    %c0_i32_1 = arith.constant 0 : i32
    return %c0_i32, %c0_i32_0 : i32, i32
  }
  func.func @transform_4(%arg0: i32) -> (i32, i32) {
    %c0_i32 = arith.constant 0 : i32
    %c0_i32_0 = arith.constant 0 : i32
    %c0_i32_1 = arith.constant 0 : i32
    return %c0_i32, %c0_i32_0 : i32, i32
  }
  func.func @transform_5(%arg0: i32) -> (i32, i32) {
    %c0_i32 = arith.constant 0 : i32
    %c0_i32_0 = arith.constant 0 : i32
    %c0_i32_1 = arith.constant 0 : i32
    return %c0_i32, %c0_i32_0 : i32, i32
  }
  func.func @transform_6(%arg0: i32) -> (i32, i32) {
    %c0_i32 = arith.constant 0 : i32
    %c0_i32_0 = arith.constant 0 : i32
    %c0_i32_1 = arith.constant 0 : i32
    return %c0_i32, %c0_i32_0 : i32, i32
  }
  func.func @transform_7(%arg0: i32) -> (i32, i32) {
    %c0_i32 = arith.constant 0 : i32
    %c0_i32_0 = arith.constant 0 : i32
    %c0_i32_1 = arith.constant 0 : i32
    return %c0_i32, %c0_i32_0 : i32, i32
  }
  func.func @transform_8(%arg0: i32) -> (i32, i32) {
    %c0_i32 = arith.constant 0 : i32
    %c0_i32_0 = arith.constant 0 : i32
    %c0_i32_1 = arith.constant 0 : i32
    return %c0_i32, %c0_i32_0 : i32, i32
  }
  func.func @transform_9(%arg0: i32) -> (i32, i32) {
    %c0_i32 = arith.constant 0 : i32
    %c0_i32_0 = arith.constant 0 : i32
    return %arg0, %c0_i32 : i32, i32
  }
  func.func @transform_10(%arg0: i32) -> (i32, i32) {
    %c0_i32 = arith.constant 0 : i32
    %c0_i32_0 = arith.constant 0 : i32
    return %arg0, %c0_i32 : i32, i32
  }
}

</mosaic_0001>

<bundles_post_ra>
// kernel: tpu_custom_call.1
= control target key start
LH: loop header
LB: loop body
LE: loop exit
PB: predicated region body
PF: predicated region fallthrough
CT: control target
= control target key end

     0   :  { %vm47_vm0 = vcmask 1043456   ;;  %vm43_vm1 = vcmask 31744   ;;  %v470_v0 = vmov 0.0   ;;  %vm471_vm2 = vmmov 0   ;;  %s598_s1 = inlined_call_operand.vmem [shape: f32[4,32], index: 1, kind: input, shape index: {}]   ;;  %s599_s0 = inlined_call_operand.vmem [shape: f32[8,4], index: 0, kind: input, shape index: {}]   ;;  %s600_s3 = inlined_call_operand.vmem [shape: f32[32,32], index: 3, kind: input, shape index: {}]   ;;  %s601_s5 = inlined_call_operand.vmem [shape: f32[32,4], index: 5, kind: input, shape index: {}]   ;;  %s602_s2 = inlined_call_operand.vmem [shape: f32[1,32], index: 2, kind: input, shape index: {}]   ;;  %s603_s7 = inlined_call_operand.vmem [shape: f32[32,4], index: 7, kind: input, shape index: {}]   ;;  %s604_s4 = inlined_call_operand.vmem [shape: f32[1,32], index: 4, kind: input, shape index: {}]   ;;  %s605_s6 = inlined_call_operand.vmem [shape: f32[1,4], index: 6, kind: input, shape index: {}]   ;;  %s606_s8 = inlined_call_operand.vmem [shape: f32[1,4], index: 8, kind: input, shape index: {}]   ;;  %s607_s9 = inlined_call_operand.vmem [shape: f32[8,4], index: 9, kind: output, shape index: {0}]   ;;  %s608_s10 = inlined_call_operand.vmem [shape: f32[8,4], index: 10, kind: output, shape index: {1}]  }
   0x1   :  { %411 = vmatprep.subr.mxu0 %v470_v0  ;;  %v35_v1 = vld [vmem:[%s598_s1] sm:$0xf]  ;;  %413 = vmatprep.mubr.msk.f32.mxu0 %vm471_vm2, %v470_v0  ;;  %v472_v4 = vmov 0.0|0.0   ;;  %v123_v5 = vld [vmem:[%s600_s3 + $0x8] sm:$0xff]  ;;  %v124_v7 = vld [vmem:[%s600_s3 + $0x10] sm:$0xff]  ;;  %vm133_vm3 = vcmask 261120  }
   0x2   :  { %v34_v2 = vld [vmem:[%s599_s0] sm:$0xff]  ;;  %412 = vmatpush3.msk.msra.mxu0 %vm47_vm0, %v35_v1  ;;  %449 = vmatprep.subr.bf16.mxu1 %v472_v4  ;;  %v125_v8 = vld [vmem:[%s600_s3 + $0x18] sm:$0xff]  ;;  %v209_v11 = vld [vmem:[%s601_s5 + $0x8] sm:$0xff] }
   0x3   :  { %v122_v3 = vld [vmem:[%s600_s3] sm:$0xff]  ;;  %414 = vmatmul.mubr.msk.f32.vlgmr.msra.gmra.mrb[0].mxu0 %vm43_vm1, %v34_v2  ;;  %424 = vmatprep.mubr.msk.f32.mxu1 %vm471_vm2, %v470_v0  ;;  %v453_v9 = vpack.c.bf16 %v125_v8, %v124_v7  ;;  %v294_v15 = vld [vmem:[%s603_s7 + $0x8] sm:$0xff]  ;;  %v210_v21 = vld [vmem:[%s601_s5 + $0x10] sm:$0xff] }
   0x4   :  { %v450_v6 = vpack.c.bf16 %v123_v5, %v122_v3  ;;  %455 = vmatprep.subr.bf16.mxu0 %v472_v4  ;;  %435 = vmatprep.mubr.msk.f32.mxu0 %vm471_vm2, %v470_v0  ;;  %v208_v10 = vld [vmem:[%s601_s5] sm:$0xff]  ;;  %v211_v22 = vld [vmem:[%s601_s5 + $0x18] sm:$0xff]  ;;  %v295_v23 = vld [vmem:[%s603_s7 + $0x10] sm:$0xff] }
   0x5   :  { %v456_v12 = vpack.c.bf16 %v209_v11, %v208_v10  ;;  %v385_v13 = vld [vmem:[%s602_s2] ss:$0 sm:$0xff]  ;;  %v459_v24 = vpack.c.bf16 %v211_v22, %v210_v21  ;;  %v296_v25 = vld [vmem:[%s603_s7 + $0x18] sm:$0xff] }
   0x6   :  { %451 = vmatpush3.bf16.msra.mxu1 %v450_v6  ;;  %v293_v14 = vld [vmem:[%s603_s7] sm:$0xff]  ;;  %v465_v26 = vpack.c.bf16 %v296_v25, %v295_v23 }
   0x7   :  { %452 = vmatprep.subr.bf16.mxu1 %v472_v4  ;;  %457 = vmatpush3.bf16.msra.mxu0 %v456_v12  ;;  %v462_v19 = vpack.c.bf16 %v294_v15, %v293_v14  ;;  %v388_v27 = vld [vmem:[%s604_s4] ss:$0 sm:$0xff] }
   0x8   :  { %458 = vmatprep.subr.bf16.mxu0 %v472_v4  ;;  %v390_v32 = vld [vmem:[%s605_s6] ss:$0 sm:$0xff] }
   0x9   :  { %v392_v33 = vld [vmem:[%s606_s8] ss:$0 sm:$0xff] }
   0xa   :  { %454 = vmatpush3.bf16.msra.mxu1 %v453_v9 }
   0xb   :  { %461 = vmatprep.subr.bf16.mxu1 %v472_v4  ;;  %460 = vmatpush3.bf16.msra.mxu0 %v459_v24 }
  0xd6   :  { %v117_v16 = vpop.f32.mrb[0].mxu0 }
  0xd7   :  { %v118_v17 = vadd.f32 %v385_v13, %v117_v16  ;;  %v415_v18 = vpop.f32.mrb[1].mxu0 }
  0xd9   :  { %v121_v20 = vmax.f32 %v118_v17, 0.0 }
  0xdb   :  { %425 = vmatmul.mubr.msk.f32.vlgmr.msra.gmra.mrb[0].mxu1 %vm133_vm3, %v121_v20 }
  0xdc   :  { %463 = vmatpush3.bf16.msra.mxu1 %v462_v19  ;;  %446 = vmatprep.mubr.msk.f32.mxu1 %vm471_vm2, %v470_v0 }
  0xdd   :  { %464 = vmatprep.subr.bf16.mxu1 %v472_v4 }
  0xe0   :  { %466 = vmatpush3.bf16.msra.mxu1 %v465_v26 }
 0x1ae   :  { %v203_v28 = vpop.f32.mrb[0].mxu1 }
 0x1af   :  { %v204_v29 = vadd.f32 %v388_v27, %v203_v28  ;;  %v426_v30 = vpop.f32.mrb[1].mxu1 }
 0x1b1   :  { %v207_v31 = vmax.f32 %v204_v29, 0.0 }
 0x1b3   :  { %436 = vmatmul.mubr.msk.f32.vlgmr.msra.gmra.mrb[2].mxu0 %vm133_vm3, %v207_v31  ;;  %447 = vmatmul.mubr.msk.f32.vlgmr.msra.gmra.mrb[2].mxu1 %vm133_vm3, %v207_v31 }
 0x286   :  { %v288_v34 = vpop.f32.mrb[2].mxu0  ;;  %v370_v35 = vpop.f32.mrb[2].mxu1 }
 0x287   :  { %v289_v36 = vadd.f32 %v390_v32, %v288_v34  ;;  %v371_v37 = vadd.f32 %v392_v33, %v370_v35  ;;  %v437_v38 = vpop.f32.mrb[3].mxu0  ;;  %v448_v39 = vpop.f32.mrb[3].mxu1 }
 0x289   :  { %292 = vst.msk [vmem:[%s607_s9] sm:$0xff] %vm43_vm1, %v289_v36  ;;  %v374_v40 = vmax.f32 %v371_v37, -20.0 }
 0x28b   :  { %v375_v41 = vmin.f32 %v374_v40, 2.0 }
 0x28d   :  { %376 = vst.msk [vmem:[%s608_s10] sm:$0xff] %vm43_vm1, %v375_v41 }

</bundles_post_ra>
